<compile_context>
chip_gen: v7x
topology: tpu7x:2x2x1
jax: 0.10.0
libtpu: 0.0.40
codegen_flags: <defaults>
</compile_context>

<pallas_src>
import jax
import jax.numpy as jnp
from jax.experimental import pallas as pl
from jax.experimental.pallas import tpu as pltpu

KH = KW = 2
CIN = 1
COUT = 2


def _round_up(n, m):
    return ((n + m - 1) // m) * m


def _matmul_div_conv_kernel(x_ref, y_ref, w_ref, b_ref, o_ref):
    """One (batch-tile, K-tile) grid step.

    x_ref: VMEM (bt, 1, Hp, tk) f32
    y_ref: VMEM (bt, 1, tk, Wp) f32
    w_ref: SMEM (COUT, KH*KW)   f32  -- conv weights, pre-scaled by 0.5
    b_ref: SMEM (COUT,)         f32
    o_ref: VMEM (bt, COUT, Hp, Wp) f32 -- resident across the K grid axis
    """
    k = pl.program_id(1)
    bt, _, hp, tk = x_ref.shape
    wp = y_ref.shape[-1]
    f32 = jnp.float32

    # Hoisted scalar (SMEM) reads: one sld per weight/bias per grid step.
    w00, w01, w10, w11 = w_ref[0, 0], w_ref[0, 1], w_ref[0, 2], w_ref[0, 3]
    v00, v01, v10, v11 = w_ref[1, 0], w_ref[1, 1], w_ref[1, 2], w_ref[1, 3]

    # Initialize the resident output block with the bias on the first K step.
    @pl.when(k == 0)
    def _():
        o_ref[:, 0] = jnp.full((bt, hp, wp), b_ref[0], f32)
        o_ref[:, 1] = jnp.full((bt, hp, wp), b_ref[1], f32)

    # Partial matmul over this K tile (MXU, batched over the batch tile).
    # conv is linear, so conv(sum_k z_k) == sum_k conv(z_k); the "/2" is
    # already folded into w_ref.
    x = x_ref[...].reshape(bt, hp, tk)
    y = y_ref[...].reshape(bt, tk, wp)
    z = jnp.einsum("bhk,bkw->bhw", x, y,
                   preferred_element_type=f32,
                   precision=jax.lax.Precision.HIGHEST)      # (bt, hp, wp)

    # 2x2 conv taps as whole-slab rolls (XLU) on the aligned 2-D view.
    # Wrapped values only land in padded / invalid rows and cols (>= H-1,
    # >= W-1), which the wrapper slices off before any consumer sees them.
    z2 = z.reshape(bt * hp, wp)
    z01 = pltpu.roll(z2, wp - 1, axis=1)                     # z[i, j+1]
    z10 = pltpu.roll(z2, bt * hp - 1, axis=0)                # z[i+1, j]
    z11 = pltpu.roll(z01, bt * hp - 1, axis=0)               # z[i+1, j+1]

    # Tap-outer / channel-inner accumulation: each tap slab is read once and
    # feeds both output channels.
    acc0 = w00 * z2
    acc1 = v00 * z2
    acc0 = acc0 + w01 * z01
    acc1 = acc1 + v01 * z01
    acc0 = acc0 + w10 * z10
    acc1 = acc1 + v10 * z10
    acc0 = acc0 + w11 * z11
    acc1 = acc1 + v11 * z11

    o_ref[:, 0] += acc0.reshape(bt, hp, wp)
    o_ref[:, 1] += acc1.reshape(bt, hp, wp)


def _tpu_vmem_limits():
    """(block budget, vmem_limit_bytes) derived from the actual chip."""
    cap = 64 << 20                      # conservative default (v7x per-TC VMEM)
    try:
        cap = int(pltpu.get_tpu_info().vmem_capacity_bytes)
    except Exception:
        pass
    limit = max(32 << 20, min((cap * 3) // 4, 100 << 20))
    budget = limit // 2                 # headroom for double-buffering + temps
    return budget, limit


def _num_tensorcores():
    """Best-effort TensorCore count (2 on v7x, 1 on v5e/v6e)."""
    try:
        info = pltpu.get_tpu_info()
        for name in ("num_cores", "core_count", "num_tensorcores",
                     "tensorcore_count"):
            v = getattr(info, name, None)
            if isinstance(v, int) and v > 0:
                return v
    except Exception:
        pass
    return 1


def _choose_batch_tile(B, per_b_bytes, budget_bytes, num_tc):
    """Largest batch tile dividing B that fits the VMEM budget; on multi-TC
    chips prefer an even number of grid steps so both cores get equal work."""
    bt = max(1, min(B, budget_bytes // max(per_b_bytes, 1)))
    while B % bt:
        bt -= 1
    if num_tc >= 2 and B >= 2:
        for cand in range(bt, 0, -1):
            if B % cand == 0 and (B // cand) % 2 == 0:
                return cand
        bt = min(bt, max(1, B // 2))
        while B % bt:
            bt -= 1
    return bt


def matmul_div_conv(x, y, weight, bias):
    """x: (B,1,H,K) f32, y: (B,1,K,W) f32, weight: (2,1,2,2), bias: (2,)."""
    x = x.astype(jnp.float32)
    y = y.astype(jnp.float32)
    B, _, H, K = x.shape
    _, _, _, W = y.shape
    Ho, Wo = H - KH + 1, W - KW + 1

    # Fold the "/ 2" of matmul(x, y) / 2 into the (linear) conv weights;
    # bias is added after the conv so it is untouched.
    w2d = (weight.reshape(COUT, KH * KW) * 0.5).astype(jnp.float32)
    b1d = bias.astype(jnp.float32)

    # Pad to TPU-native tiles: H -> sublane multiple (8), W -> lane multiple
    # (128), K -> contraction tile.  Zero padding is exact for the matmul;
    # the padded output rows/cols are sliced off below.
    Hp = _round_up(H, 8)
    Wp = _round_up(W, 128)
    Kp = _round_up(K, 8)
    if Kp > 1024:                       # tile large contractions
        tk = 512
        Kp = _round_up(Kp, tk)
    else:
        tk = Kp
    nk = Kp // tk

    if (Hp, Kp) != (H, K):
        x = jnp.pad(x, ((0, 0), (0, 0), (0, Hp - H), (0, Kp - K)))
    if (Kp, Wp) != (K, W):
        y = jnp.pad(y, ((0, 0), (0, 0), (0, Kp - K), (0, Wp - W)))

    budget, vmem_limit = _tpu_vmem_limits()
    per_b = (4 * 2 * (Hp * tk + tk * Wp)        # double-buffered x / y blocks
             + 4 * 2 * COUT * Hp * Wp           # double-buffered output block
             + 4 * 8 * Hp * Wp)                 # z + taps + accs transients
    bt = _choose_batch_tile(B, per_b, budget, _num_tensorcores())
    grid = (B // bt, nk)

    cost = pl.CostEstimate(
        flops=2 * B * Hp * Kp * Wp + 2 * B * COUT * KH * KW * Hp * Wp,
        transcendentals=0,
        bytes_accessed=(4 * B * (Hp * Kp + Kp * Wp + COUT * Hp * Wp)
                        # post-call valid-region slice (read slab + write valid)
                        + 4 * B * COUT * (Hp * Wp + Ho * Wo)),
    )

    out_full = pl.pallas_call(
        _matmul_div_conv_kernel,
        out_shape=jax.ShapeDtypeStruct((B, COUT, Hp, Wp), jnp.float32),
        grid=grid,
        in_specs=[
            pl.BlockSpec((bt, 1, Hp, tk), lambda i, k: (i, 0, 0, k)),
            pl.BlockSpec((bt, 1, tk, Wp), lambda i, k: (i, 0, k, 0)),
            pl.BlockSpec(memory_space=pltpu.MemorySpace.SMEM),   # conv weight
            pl.BlockSpec(memory_space=pltpu.MemorySpace.SMEM),   # conv bias
        ],
        out_specs=pl.BlockSpec((bt, COUT, Hp, Wp), lambda i, k: (i, 0, 0, 0)),
        compiler_params=pltpu.CompilerParams(
            dimension_semantics=("parallel", "arbitrary"),
            vmem_limit_bytes=int(vmem_limit)),
        cost_estimate=cost,
    )(x, y, w2d, b1d)

    # Valid region of the 2x2 "VALID" conv; padded rows/cols are dropped here
    # (kept outside the kernel so in-kernel stores stay lane-dense).
    return out_full[:, :, :Ho, :Wo]


if __name__ == "__main__":
    # Deterministic parameter init (NNCF create_conv(1, 2, 2, 2) semantics):
    # weight filled with 2.0 plus eye(kernel_size), bias filled with 0.
    weight = jnp.full((COUT, CIN, KH, KW), 2.0, dtype=jnp.float32) \
        + jnp.eye(KH, dtype=jnp.float32)[None, None, :, :]
    bias = jnp.zeros((COUT,), dtype=jnp.float32)

    # Small example inputs (matmul must produce an NCHW tensor with 1 channel).
    key = jax.random.PRNGKey(0)
    kx, ky = jax.random.split(key)
    x = jax.random.normal(kx, (2, 1, 16, 8), dtype=jnp.float32)
    y = jax.random.normal(ky, (2, 1, 8, 16), dtype=jnp.float32)

    out = matmul_div_conv(x, y, weight, bias)
    out = jax.block_until_ready(out)

    # Pure-JAX reference for a sanity check.
    z = jnp.matmul(x, y) / 2.0
    ref = jax.lax.conv_general_dilated(
        z, weight, window_strides=(1, 1), padding="VALID",
        dimension_numbers=("NCHW", "OIHW", "NCHW")) + bias[None, :, None, None]
    assert out.shape == ref.shape, (out.shape, ref.shape)
    assert jnp.allclose(out, ref, atol=1e-4, rtol=1e-4), "mismatch vs reference"

    print("KERNEL_OK")
</pallas_src>

<mosaic_0001>
module attributes {stable_mosaic.version = 11 : i64} {
  func.func @_matmul_div_conv_kernel(%arg0: i32, %arg1: i32, %arg2: memref<2x1x16x8xf32, #tpu.memory_space<vmem>>, %arg3: memref<2x1x8x128xf32, #tpu.memory_space<vmem>>, %arg4: memref<2x4xf32, #tpu.memory_space<smem>>, %arg5: memref<2xf32, #tpu.memory_space<smem>>, %arg6: memref<2x2x16x128xf32, #tpu.memory_space<vmem>>) attributes {dimension_semantics = [#tpu.dimension_semantics<parallel>, #tpu.dimension_semantics<arbitrary>], iteration_bounds = array<i64: 1, 1>, scalar_prefetch = 0 : i64, scratch_operands = 0 : i64, tpu.core_type = #tpu.core_type<tc>, window_params = [{transform_indices = @transform_0, window_bounds = array<i64: 2, 1, 16, 8>}, {transform_indices = @transform_1, window_bounds = array<i64: 2, 1, 8, 128>}, {transform_indices = @transform_2, window_bounds = array<i64: 2, 4>}, {transform_indices = @transform_3, window_bounds = array<i64: 2>}, {transform_indices = @transform_4, window_bounds = array<i64: 2, 2, 16, 128>}]} {
    %c0 = arith.constant 0 : index
    %c0_0 = arith.constant 0 : index
    %0 = memref.load %arg4[%c0, %c0_0] : memref<2x4xf32, #tpu.memory_space<smem>>
    %c0_1 = arith.constant 0 : index
    %c1 = arith.constant 1 : index
    %1 = memref.load %arg4[%c0_1, %c1] : memref<2x4xf32, #tpu.memory_space<smem>>
    %c0_2 = arith.constant 0 : index
    %c2 = arith.constant 2 : index
    %2 = memref.load %arg4[%c0_2, %c2] : memref<2x4xf32, #tpu.memory_space<smem>>
    %c0_3 = arith.constant 0 : index
    %c3 = arith.constant 3 : index
    %3 = memref.load %arg4[%c0_3, %c3] : memref<2x4xf32, #tpu.memory_space<smem>>
    %c1_4 = arith.constant 1 : index
    %c0_5 = arith.constant 0 : index
    %4 = memref.load %arg4[%c1_4, %c0_5] : memref<2x4xf32, #tpu.memory_space<smem>>
    %c1_6 = arith.constant 1 : index
    %c1_7 = arith.constant 1 : index
    %5 = memref.load %arg4[%c1_6, %c1_7] : memref<2x4xf32, #tpu.memory_space<smem>>
    %c1_8 = arith.constant 1 : index
    %c2_9 = arith.constant 2 : index
    %6 = memref.load %arg4[%c1_8, %c2_9] : memref<2x4xf32, #tpu.memory_space<smem>>
    %c1_10 = arith.constant 1 : index
    %c3_11 = arith.constant 3 : index
    %7 = memref.load %arg4[%c1_10, %c3_11] : memref<2x4xf32, #tpu.memory_space<smem>>
    %c0_i32 = arith.constant 0 : i32
    %8 = arith.cmpi eq, %arg1, %c0_i32 : i32
    %9 = arith.extui %8 : i1 to i32
    %c0_i32_12 = arith.constant 0 : i32
    %10 = arith.cmpi ne, %9, %c0_i32_12 : i32
    scf.if %10 {
      %c0_38 = arith.constant 0 : index
      %56 = memref.load %arg5[%c0_38] : memref<2xf32, #tpu.memory_space<smem>>
      %57 = vector.broadcast %56 : f32 to vector<2x16x128xf32>
      %c0_39 = arith.constant 0 : index
      %c0_40 = arith.constant 0 : index
      %c0_41 = arith.constant 0 : index
      %c0_42 = arith.constant 0 : index
      %58 = vector.load %arg6[%c0_39, %c0_40, %c0_41, %c0_42] : memref<2x2x16x128xf32, #tpu.memory_space<vmem>>, vector<2x1x16x128xf32>
      %59 = vector.shape_cast %58 : vector<2x1x16x128xf32> to vector<2x16x128xf32>
      %60 = vector.shape_cast %57 : vector<2x16x128xf32> to vector<2x1x16x128xf32>
      tpu.vector_store %arg6[%c0_39, %c0_40, %c0_41, %c0_42], %60 {strides = array<i32>} : memref<2x2x16x128xf32, #tpu.memory_space<vmem>>, vector<2x1x16x128xf32>,
      %c1_43 = arith.constant 1 : index
      %61 = memref.load %arg5[%c1_43] : memref<2xf32, #tpu.memory_space<smem>>
      %62 = vector.broadcast %61 : f32 to vector<2x16x128xf32>
      %c0_44 = arith.constant 0 : index
      %c1_45 = arith.constant 1 : index
      %c0_46 = arith.constant 0 : index
      %c0_47 = arith.constant 0 : index
      %63 = vector.load %arg6[%c0_44, %c1_45, %c0_46, %c0_47] : memref<2x2x16x128xf32, #tpu.memory_space<vmem>>, vector<2x1x16x128xf32>
      %64 = vector.shape_cast %63 : vector<2x1x16x128xf32> to vector<2x16x128xf32>
      %65 = vector.shape_cast %62 : vector<2x16x128xf32> to vector<2x1x16x128xf32>
      tpu.vector_store %arg6[%c0_44, %c1_45, %c0_46, %c0_47], %65 {strides = array<i32>} : memref<2x2x16x128xf32, #tpu.memory_space<vmem>>, vector<2x1x16x128xf32>,
    } else {
    }
    %c0_13 = arith.constant 0 : index
    %c0_14 = arith.constant 0 : index
    %c0_15 = arith.constant 0 : index
    %c0_16 = arith.constant 0 : index
    %11 = vector.load %arg2[%c0_13, %c0_14, %c0_15, %c0_16] : memref<2x1x16x8xf32, #tpu.memory_space<vmem>>, vector<2x1x16x8xf32>
    %12 = vector.shape_cast %11 : vector<2x1x16x8xf32> to vector<2x16x8xf32>
    %c0_17 = arith.constant 0 : index
    %c0_18 = arith.constant 0 : index
    %c0_19 = arith.constant 0 : index
    %c0_20 = arith.constant 0 : index
    %13 = vector.load %arg3[%c0_17, %c0_18, %c0_19, %c0_20] : memref<2x1x8x128xf32, #tpu.memory_space<vmem>>, vector<2x1x8x128xf32>
    %14 = vector.shape_cast %13 : vector<2x1x8x128xf32> to vector<2x8x128xf32>
    "tpu.trace_start"() <{level = 10 : i32, message = "bhk,bkw->bhw"}> : () -> ()
    %cst = arith.constant dense<0.000000e+00> : vector<2x16x128xf32>
    %15 = tpu.matmul %12, %14, %cst {dimension_numbers = #tpu.dot_dimension_numbers<[2], [1], [1], [2], [0, 0, 0, 1, 1, 2], [0], [0]>, precision = #tpu.contract_precision<fp32>} : vector<2x16x8xf32>, vector<2x8x128xf32>, vector<2x16x128xf32> -> vector<2x16x128xf32>
    "tpu.trace_stop"() : () -> ()
    %16 = vector.shape_cast %15 : vector<2x16x128xf32> to vector<32x128xf32>
    %c127_i32 = arith.constant 127 : i32
    %17 = tpu.dynamic_rotate %16 by %c127_i32 dim 1 : vector<32x128xf32>, i32 -> vector<32x128xf32>
    %c31_i32 = arith.constant 31 : i32
    %18 = tpu.dynamic_rotate %16 by %c31_i32 dim 0 : vector<32x128xf32>, i32 -> vector<32x128xf32>
    %c31_i32_21 = arith.constant 31 : i32
    %19 = tpu.dynamic_rotate %17 by %c31_i32_21 dim 0 : vector<32x128xf32>, i32 -> vector<32x128xf32>
    %20 = vector.broadcast %0 : f32 to vector<32x128xf32>
    %21 = arith.mulf %20, %16 : vector<32x128xf32>
    %22 = vector.broadcast %4 : f32 to vector<32x128xf32>
    %23 = arith.mulf %22, %16 : vector<32x128xf32>
    %24 = vector.broadcast %1 : f32 to vector<32x128xf32>
    %25 = arith.mulf %24, %17 : vector<32x128xf32>
    %26 = arith.addf %21, %25 : vector<32x128xf32>
    %27 = vector.broadcast %5 : f32 to vector<32x128xf32>
    %28 = arith.mulf %27, %17 : vector<32x128xf32>
    %29 = arith.addf %23, %28 : vector<32x128xf32>
    %30 = vector.broadcast %2 : f32 to vector<32x128xf32>
    %31 = arith.mulf %30, %18 : vector<32x128xf32>
    %32 = arith.addf %26, %31 : vector<32x128xf32>
    %33 = vector.broadcast %6 : f32 to vector<32x128xf32>
    %34 = arith.mulf %33, %18 : vector<32x128xf32>
    %35 = arith.addf %29, %34 : vector<32x128xf32>
    %36 = vector.broadcast %3 : f32 to vector<32x128xf32>
    %37 = arith.mulf %36, %19 : vector<32x128xf32>
    %38 = arith.addf %32, %37 : vector<32x128xf32>
    %39 = vector.broadcast %7 : f32 to vector<32x128xf32>
    %40 = arith.mulf %39, %19 : vector<32x128xf32>
    %41 = arith.addf %35, %40 : vector<32x128xf32>
    %c0_22 = arith.constant 0 : index
    %c0_23 = arith.constant 0 : index
    %c0_24 = arith.constant 0 : index
    %c0_25 = arith.constant 0 : index
    %42 = vector.load %arg6[%c0_22, %c0_23, %c0_24, %c0_25] : memref<2x2x16x128xf32, #tpu.memory_space<vmem>>, vector<2x1x16x128xf32>
    %43 = vector.shape_cast %42 : vector<2x1x16x128xf32> to vector<2x16x128xf32>
    %44 = vector.shape_cast %38 : vector<32x128xf32> to vector<2x16x128xf32>
    %45 = arith.addf %43, %44 : vector<2x16x128xf32>
    %c0_26 = arith.constant 0 : index
    %c0_27 = arith.constant 0 : index
    %c0_28 = arith.constant 0 : index
    %c0_29 = arith.constant 0 : index
    %46 = vector.load %arg6[%c0_26, %c0_27, %c0_28, %c0_29] : memref<2x2x16x128xf32, #tpu.memory_space<vmem>>, vector<2x1x16x128xf32>
    %47 = vector.shape_cast %46 : vector<2x1x16x128xf32> to vector<2x16x128xf32>
    %48 = vector.shape_cast %45 : vector<2x16x128xf32> to vector<2x1x16x128xf32>
    tpu.vector_store %arg6[%c0_26, %c0_27, %c0_28, %c0_29], %48 {strides = array<i32>} : memref<2x2x16x128xf32, #tpu.memory_space<vmem>>, vector<2x1x16x128xf32>,
    %c0_30 = arith.constant 0 : index
    %c1_31 = arith.constant 1 : index
    %c0_32 = arith.constant 0 : index
    %c0_33 = arith.constant 0 : index
    %49 = vector.load %arg6[%c0_30, %c1_31, %c0_32, %c0_33] : memref<2x2x16x128xf32, #tpu.memory_space<vmem>>, vector<2x1x16x128xf32>
    %50 = vector.shape_cast %49 : vector<2x1x16x128xf32> to vector<2x16x128xf32>
    %51 = vector.shape_cast %41 : vector<32x128xf32> to vector<2x16x128xf32>
    %52 = arith.addf %50, %51 : vector<2x16x128xf32>
    %c0_34 = arith.constant 0 : index
    %c1_35 = arith.constant 1 : index
    %c0_36 = arith.constant 0 : index
    %c0_37 = arith.constant 0 : index
    %53 = vector.load %arg6[%c0_34, %c1_35, %c0_36, %c0_37] : memref<2x2x16x128xf32, #tpu.memory_space<vmem>>, vector<2x1x16x128xf32>
    %54 = vector.shape_cast %53 : vector<2x1x16x128xf32> to vector<2x16x128xf32>
    %55 = vector.shape_cast %52 : vector<2x16x128xf32> to vector<2x1x16x128xf32>
    tpu.vector_store %arg6[%c0_34, %c1_35, %c0_36, %c0_37], %55 {strides = array<i32>} : memref<2x2x16x128xf32, #tpu.memory_space<vmem>>, vector<2x1x16x128xf32>,
    return
  }
  func.func @transform_0(%arg0: i32, %arg1: i32) -> (i32, i32, i32, i32) {
    %c0_i32 = arith.constant 0 : i32
    %c0_i32_0 = arith.constant 0 : i32
    %c0_i32_1 = arith.constant 0 : i32
    return %arg0, %c0_i32, %c0_i32_0, %arg1 : i32, i32, i32, i32
  }
  func.func @transform_1(%arg0: i32, %arg1: i32) -> (i32, i32, i32, i32) {
    %c0_i32 = arith.constant 0 : i32
    %c0_i32_0 = arith.constant 0 : i32
    %c0_i32_1 = arith.constant 0 : i32
    return %arg0, %c0_i32, %arg1, %c0_i32_0 : i32, i32, i32, i32
  }
  func.func @transform_2(%arg0: i32, %arg1: i32) -> (i32, i32) {
    %c0_i32 = arith.constant 0 : i32
    %c0_i32_0 = arith.constant 0 : i32
    %c0_i32_1 = arith.constant 0 : i32
    return %c0_i32, %c0_i32_0 : i32, i32
  }
  func.func @transform_3(%arg0: i32, %arg1: i32) -> i32 {
    %c0_i32 = arith.constant 0 : i32
    %c0_i32_0 = arith.constant 0 : i32
    return %c0_i32 : i32
  }
  func.func @transform_4(%arg0: i32, %arg1: i32) -> (i32, i32, i32, i32) {
    %c0_i32 = arith.constant 0 : i32
    %c0_i32_0 = arith.constant 0 : i32
    %c0_i32_1 = arith.constant 0 : i32
    %c0_i32_2 = arith.constant 0 : i32
    return %arg0, %c0_i32, %c0_i32_0, %c0_i32_1 : i32, i32, i32, i32
  }
}

</mosaic_0001>

<bundles_post_ra>
// kernel: tpu_custom_call.1
= control target key start
LH: loop header
LB: loop body
LE: loop exit
PB: predicated region body
PF: predicated region fallthrough
CT: control target
= control target key end

     0   :  { %9 = vsyncpa [#allocation4], 0  ;;  %s1533_s0 = inlined_call_operand.vmem [shape: f32[2,1,16,8], index: 0, kind: input, shape index: {}]   ;;  %s1534_s1 = inlined_call_operand.vmem [shape: f32[2,1,8,128], index: 1, kind: input, shape index: {}]   ;;  %s1535_s2 = inlined_call_operand.vmem [shape: f32[2,4], index: 2, kind: input, shape index: {}]   ;;  %s1536_s3 = inlined_call_operand.vmem [shape: f32[2], index: 3, kind: input, shape index: {}]   ;;  %s1537_s4 = inlined_call_operand.hbm [shape: f32[2,2,16,128], index: 4, kind: output, shape index: {}]  }
   0x1   :  { %10 = vsyncpa [#allocation6], 0 }
   0x2   :  { %11 = vsyncpa [#allocation3], 0  ;;  %s22_s17 = sshll.u32 %s1535_s2, 4  ;;  %s32_s20 = sshll.u32 %s1536_s3, 4  ;;  %s23_s17 = int_to_ptr.vmem [resolvable:$true] %s22_s17  ;;  %s33_s20 = int_to_ptr.vmem [resolvable:$true] %s32_s20 }
   0x3   :  { %s1329_s21 = scalar_lea.vmem %s23_s17, 32  ;;  %p1334_p1 = scmp.lt.s32.totalorder %s23_s17, %s23_s17 }
   0x4   :  { %p1330_p0 = scmp.ne.s32.totalorder %s23_s17, %s1329_s21  ;;  %p1335_p2 = scmp.lt.s32.totalorder %s1329_s21, %s1329_s21 }
   0x6   :  { %p1336_p3 = por %p1335_p2, %p1334_p1 }
   0x8   :  { %p1337_p4 = pnand %p1336_p3, %p1330_p0 }
   0xa   :  { %1340 = shalt.err (!%p1337_p4)
}
   0xb   :  { %s1381_s22 = smov [#allocation2]   ;;  %s1341_s23 = scalar_lea.vmem %s33_s20, 16 }
   0xc   :  { %25 = dma.vmem_to_smem %s23_s17, 32, %s1381_s22, [#allocation4]  }
   0xd   :  { %p1342_p5 = scmp.ne.s32.totalorder %s33_s20, %s1341_s23  ;;  %p1346_p6 = scmp.lt.s32.totalorder %s33_s20, %s33_s20 }
   0xe   :  { %p1347_p7 = scmp.lt.s32.totalorder %s1341_s23, %s1341_s23 }
  0x10   :  { %p1348_p8 = por %p1347_p7, %p1346_p6 }
  0x12   :  { %p1349_p9 = pnand %p1348_p8, %p1342_p5 }
  0x14   :  { %1352 = shalt.err (!%p1349_p9)
}
  0x15   :  { %s1382_s2 = smov [#allocation5]  }
  0x16   :  { %35 = dma.vmem_to_smem %s33_s20, 16, %s1382_s2, [#allocation6]  }
  0x17   :  { %1375 = dma.done.wait [#allocation4], 32  }
  0x18   :  { %1376 = vsyncadd [#allocation4], 4294967264 }
  0x19   :  { %1377 = dma.done.wait [#allocation6], 16  }
  0x1a   :  { %1378 = vsyncadd [#allocation6], 4294967280 }
  0x1b   :  { %42 = sfence }
  0x1c   :  { %v72_v0 = vld [vmem:[%s1534_s1] sm:$0xff]  ;;  %v73_v1 = vld [vmem:[%s1534_s1 + $0x8] sm:$0xff]  ;;  %vm74_vm0 = vcmask 64512   ;;  %v70_v6 = vld [vmem:[%s1533_s0 + $0x10] sm:$0xff]  ;;  %v1077_v40 = vlaneseq  ;;  %s43_s8 = sld [smem:[#allocation2]]  ;;  %s1200_s10 = sld [smem:[#allocation2 + $0x2]] }
  0x1d   :  { %v68_v2 = vld [vmem:[%s1533_s0] sm:$0xff]  ;;  %v1427_v3 = vand.u32 4294901760, %v72_v0  ;;  %v1429_v4 = vand.u32 4294901760, %v73_v1  ;;  %v69_v7 = vld [vmem:[%s1533_s0 + $0x8] sm:$0xff]  ;;  %v71_v8 = vld [vmem:[%s1533_s0 + $0x18] sm:$0xff]  ;;  %v571_v10 = vsel %vm74_vm0, %v70_v6, 0 }
  0x1e   :  { %v76_v5 = vsel %vm74_vm0, %v68_v2, 0  ;;  %v79_v11 = vsel %vm74_vm0, %v69_v7, 0  ;;  %v574_v12 = vsel %vm74_vm0, %v71_v8, 0  ;;  %v1445_v14 = vand.u32 4294901760, %v571_v10  ;;  %s1383_s0 = smov 127   ;;  %s1202_s9 = sld [smem:[#allocation2 + $0x80]] }
  0x1f   :  { %v1440_v9 = vand.u32 4294901760, %v76_v5  ;;  %1243 = vmatprep.subr.mxu0 %v1427_v3  ;;  %1273 = vmatprep.subr.mxu1 %v1429_v4  ;;  %v169_v13 = vsub.f32 %v72_v0, %v1427_v3  ;;  %v664_v15 = vsub.f32 %v73_v1, %v1429_v4  ;;  %v1448_v16 = vand.u32 4294901760, %v79_v11  ;;  %s1204_s11 = sld [smem:[#allocation2 + $0x82]]  ;;  %s1199_s12 = sld [smem:[#allocation2 + $0x1]] }
  0x20   :  { %1244 = vmatpush3.msra.mxu0 %v1427_v3  ;;  %1274 = vmatpush3.msra.mxu1 %v1429_v4  ;;  %v1453_v18 = vand.u32 4294901760, %v574_v12  ;;  %v643_v20 = vsub.f32 %v571_v10, %v1445_v14  ;;  %v1478_v41 = vshrl.u32 %v1077_v40, 7  ;;  %s1203_s13 = sld [smem:[#allocation2 + $0x81]]  ;;  %s1201_s14 = sld [smem:[#allocation2 + $0x3]] }
  0x21   :  { %v148_v17 = vsub.f32 %v76_v5, %v1440_v9  ;;  %v170_v19 = vand.u32 4294901760, %v169_v13  ;;  %v665_v21 = vand.u32 4294901760, %v664_v15  ;;  %v158_v22 = vsub.f32 %v79_v11, %v1448_v16  ;;  %s1205_s15 = sld [smem:[#allocation2 + $0x83]]  ;;  %s55_s16 = sld [smem:[#allocation5]] }
  0x22   :  { %v653_v24 = vsub.f32 %v574_v12, %v1453_v18  ;;  %v644_v26 = vand.u32 4294901760, %v643_v20  ;;  %vm1079_vm1 = vcmp.lt.s32.totalorder %v1478_v41, 7  ;;  %s1206_s17 = sld [smem:[#allocation5 + $0x1]]  ;;  %v1092_v54 = vstv %s43_s8  ;;  %s1384_s18 = smov [#allocation7]  }
  0x23   :  { %v149_v23 = vand.u32 4294901760, %v148_v17  ;;  %v171_v25 = vsub.f32 %v169_v13, %v170_v19  ;;  %v666_v27 = vsub.f32 %v664_v15, %v665_v21  ;;  %v159_v28 = vand.u32 4294901760, %v158_v22  ;;  %s1186_s19 = sshll.u32 %s1384_s18, 4  ;;  %s1187_s19 = int_to_ptr.vmem [resolvable:$true] %s1186_s19 }
  0x24   :  { %v654_v30 = vand.u32 4294901760, %v653_v24  ;;  %v645_v32 = vsub.f32 %v643_v20, %v644_v26  ;;  %v1097_v55 = vstv %s1202_s9  ;;  %v1120_v56 = vstv %s1200_s10  ;;  %s1353_s20 = scalar_lea.vmem %s1187_s19, 1024  ;;  %p1358_p11 = scmp.lt.s32.totalorder %s1187_s19, %s1187_s19 }
  0x25   :  { %v150_v29 = vsub.f32 %v148_v17, %v149_v23  ;;  %v172_v31 = vand.u32 4294901760, %v171_v25  ;;  %v667_v33 = vand.u32 4294901760, %v666_v27  ;;  %v160_v34 = vsub.f32 %v158_v22, %v159_v28  ;;  %p1354_p10 = scmp.ne.s32.totalorder %s1187_s19, %s1353_s20  ;;  %p1359_p12 = scmp.lt.s32.totalorder %s1353_s20, %s1353_s20 }
  0x26   :  { %v655_v36 = vsub.f32 %v653_v24, %v654_v30  ;;  %v646_v37 = vand.u32 4294901760, %v645_v32  ;;  %v1129_v57 = vstv %s1204_s11  ;;  %v1102_v58 = vstv %s1199_s12 }
  0x27   :  { %v151_v35 = vand.u32 4294901760, %v150_v29  ;;  %1248 = vmatprep.subr.mxu0 %v172_v31  ;;  %1278 = vmatprep.subr.mxu1 %v667_v33  ;;  %v161_v38 = vand.u32 4294901760, %v160_v34  ;;  %v1111_v59 = vstv %s1203_s13  ;;  %v1489_v60 = vstv %s1201_s14  ;;  %p1360_p13 = por %p1359_p12, %p1358_p11 }
  0x28   :  { %v656_v39 = vand.u32 4294901760, %v655_v36  ;;  %1275 = vmatprep.mubr.f32.mxu1 %v646_v37  ;;  %v1491_v61 = vstv %s1205_s15  ;;  %v1493_v62 = vstv %s55_s16  ;;  %v1495_v63 = vstv %s1206_s17 }
  0x29   :  { %1245 = vmatprep.mubr.f32.mxu0 %v151_v35  ;;  %p1361_p0 = pnand %p1360_p13, %p1354_p10 }
  0x2a   :  { %1246 = vmatmul.mubr.f32.vlgmr.msra.gmra.mrb[0].mxu0 %v161_v38  ;;  %1276 = vmatmul.mubr.f32.vlgmr.msra.gmra.mrb[0].mxu1 %v656_v39 }
  0x2b   :  { %1249 = vmatpush3.msra.mxu0 %v172_v31  ;;  %1279 = vmatpush3.msra.mxu1 %v667_v33 }
  0x2c   :  { %1250 = vmatprep.mubr.f32.mxu0 %v1440_v9  ;;  %1253 = vmatprep.subr.mxu0 %v169_v13 }
  0x2d   :  { %1280 = vmatprep.mubr.f32.mxu1 %v1445_v14  ;;  %1283 = vmatprep.subr.mxu1 %v664_v15 }
  0x32   :  { %1251 = vmatmul.mubr.f32.vlgmr.msra.gmra.mrb[0].mxu0 %v1448_v16  ;;  %1281 = vmatmul.mubr.f32.vlgmr.msra.gmra.mrb[0].mxu1 %v1453_v18 }
  0x33   :  { %1254 = vmatpush3.msra.mxu0 %v169_v13  ;;  %1284 = vmatpush3.msra.mxu1 %v664_v15 }
  0x34   :  { %1255 = vmatprep.mubr.f32.mxu0 %v148_v17  ;;  %1258 = vmatprep.subr.mxu0 %v1427_v3 }
  0x35   :  { %1285 = vmatprep.mubr.f32.mxu1 %v643_v20  ;;  %1288 = vmatprep.subr.mxu1 %v1429_v4 }
  0x3a   :  { %1256 = vmatmul.mubr.f32.vlgmr.msra.gmra.mrb[0].mxu0 %v158_v22  ;;  %1286 = vmatmul.mubr.f32.vlgmr.msra.gmra.mrb[0].mxu1 %v653_v24 }
  0x3b   :  { %1259 = vmatpush3.msra.mxu0 %v1427_v3  ;;  %1289 = vmatpush3.msra.mxu1 %v1429_v4 }
  0x3c   :  { %1260 = vmatprep.mubr.f32.mxu0 %v149_v23  ;;  %1263 = vmatprep.subr.mxu0 %v170_v19 }
  0x3d   :  { %1290 = vmatprep.mubr.f32.mxu1 %v644_v26  ;;  %1293 = vmatprep.subr.mxu1 %v665_v21 }
  0x42   :  { %1261 = vmatmul.mubr.f32.vlgmr.msra.gmra.mrb[0].mxu0 %v159_v28  ;;  %1291 = vmatmul.mubr.f32.vlgmr.msra.gmra.mrb[0].mxu1 %v654_v30 }
  0x43   :  { %1264 = vmatpush3.msra.mxu0 %v170_v19  ;;  %1294 = vmatpush3.msra.mxu1 %v665_v21 }
  0x44   :  { %1265 = vmatprep.mubr.f32.mxu0 %v1440_v9  ;;  %1268 = vmatprep.subr.mxu0 %v1427_v3 }
  0x45   :  { %1295 = vmatprep.mubr.f32.mxu1 %v1445_v14  ;;  %1298 = vmatprep.subr.mxu1 %v1429_v4 }
  0x4a   :  { %1266 = vmatmul.mubr.f32.vlgmr.msra.gmra.mrb[0].mxu0 %v1448_v16  ;;  %1296 = vmatmul.mubr.f32.vlgmr.msra.gmra.mrb[0].mxu1 %v1453_v18 }
  0x4b   :  { %1269 = vmatpush3.msra.mxu0 %v1427_v3  ;;  %1299 = vmatpush3.msra.mxu1 %v1429_v4 }
  0x4c   :  { %1270 = vmatprep.mubr.f32.mxu0 %v1440_v9  ;;  %1300 = vmatprep.mubr.f32.mxu1 %v1445_v14 }
  0x52   :  { %1271 = vmatmul.mubr.f32.vlgmr.msra.gmra.mrb[0].mxu0 %v1448_v16  ;;  %1301 = vmatmul.mubr.f32.vlgmr.msra.gmra.mrb[0].mxu1 %v1453_v18 }
 0x125   :  { %v1272_v42 = vpop.f32.mrb[0].mxu0  ;;  %v1302_v44 = vpop.f32.mrb[0].mxu1 }
 0x126   :  { %v1074_v43 = vrot.slane %v1272_v42, 1  ;;  %v560_v45 = vpop.f32.mrb[1].mxu0  ;;  %v1076_v46 = vrot.slane %v1302_v44, 1  ;;  %v1055_v48 = vpop.f32.mrb[1].mxu1  ;;  %v1094_v0 = vmul.f32 %v1272_v42, %v1092_v54  ;;  %v1099_v1 = vmul.f32 %v1272_v42, %v1097_v55 }
 0x127   :  { %v1073_v47 = vrot.slane %v560_v45, 1  ;;  %1065 = vrot.lane.b32.xlu0 %v560_v45, %s1383_s0  ;;  %v1075_v49 = vrot.slane %v1055_v48, 1  ;;  %1069 = vrot.lane.b32.xlu1 %v1055_v48, %s1383_s0  ;;  %v1093_v2 = vmul.f32 %v1092_v54, %v560_v45  ;;  %v1098_v3 = vmul.f32 %v1097_v55, %v560_v45 }
 0x128   :  { %v1095_v4 = vmul.f32 %v1092_v54, %v1055_v48  ;;  %v1100_v5 = vmul.f32 %v1097_v55, %v1055_v48  ;;  %v1096_v9 = vmul.f32 %v1302_v44, %v1092_v54  ;;  %v1101_v10 = vmul.f32 %v1302_v44, %v1097_v55 }
 0x129   :  { %v1082_v50 = vsel %vm1079_vm1, %v1073_v47, %v1074_v43  ;;  %v1083_v51 = vsel %vm1079_vm1, %v1076_v46, %v1073_v47  ;;  %v1080_v52 = vsel %vm1079_vm1, %v1075_v49, %v1076_v46  ;;  %v1081_v53 = vsel %vm1079_vm1, %v1074_v43, %v1075_v49 }
 0x12a   :  { %v1121_v6 = vmul.f32 %v1120_v56, %v1082_v50  ;;  %v1130_v7 = vmul.f32 %v1129_v57, %v1082_v50  ;;  %v1123_v11 = vmul.f32 %v1120_v56, %v1080_v52  ;;  %v1132_v12 = vmul.f32 %v1129_v57, %v1080_v52 }
 0x12b   :  { %1067 = vrot.lane.b32.xlu0 %v1272_v42, %s1383_s0  ;;  %1071 = vrot.lane.b32.xlu1 %v1302_v44, %s1383_s0  ;;  %v1124_v18 = vmul.f32 %v1120_v56, %v1083_v51  ;;  %v1133_v19 = vmul.f32 %v1129_v57, %v1083_v51  ;;  %v1122_v22 = vmul.f32 %v1120_v56, %v1081_v53 }
 0x12c   :  { %v1131_v23 = vmul.f32 %v1129_v57, %v1081_v53 }
 0x199   :  { %v1066_v8 = vpop.permute.xlu0 %1065  ;;  %v1070_v13 = vpop.permute.xlu1 %1069 }
 0x19a   :  { %v1103_v14 = vmul.f32 %v1102_v58, %v1066_v8  ;;  %v1112_v15 = vmul.f32 %v1111_v59, %v1066_v8  ;;  %v1105_v16 = vmul.f32 %v1102_v58, %v1070_v13  ;;  %v1114_v17 = vmul.f32 %v1111_v59, %v1070_v13 }
 0x19b   :  { %v1086_v24 = vrot.slane %v1070_v13, 1  ;;  %v1084_v27 = vrot.slane %v1066_v8, 1 }
 0x19c   :  { %v1107_v20 = vadd.f32 %v1103_v14, %v1093_v2  ;;  %v1116_v21 = vadd.f32 %v1112_v15, %v1098_v3  ;;  %v1109_v25 = vadd.f32 %v1105_v16, %v1095_v4  ;;  %v1118_v26 = vadd.f32 %v1114_v17, %v1100_v5 }
 0x19d   :  { %v1068_v28 = vpop.permute.xlu0 %1067  ;;  %v1072_v31 = vpop.permute.xlu1 %1071 }
 0x19e   :  { %v1125_v29 = vadd.f32 %v1121_v6, %v1107_v20  ;;  %v1134_v30 = vadd.f32 %v1130_v7, %v1116_v21  ;;  %v1085_v32 = vrot.slane %v1068_v28, 1  ;;  %v1104_v33 = vmul.f32 %v1102_v58, %v1068_v28 }
 0x19f   :  { %v1127_v34 = vadd.f32 %v1123_v11, %v1109_v25  ;;  %v1136_v35 = vadd.f32 %v1132_v12, %v1118_v26  ;;  %v1087_v36 = vrot.slane %v1072_v31, 1  ;;  %v1106_v37 = vmul.f32 %v1102_v58, %v1072_v31 }
 0x1a0   :  { %v1115_v38 = vmul.f32 %v1111_v59, %v1072_v31  ;;  %v1089_v39 = vsel %vm1079_vm1, %v1085_v32, %v1086_v24  ;;  %v1090_v40 = vsel %vm1079_vm1, %v1084_v27, %v1085_v32  ;;  %v1108_v42 = vadd.f32 %v1104_v33, %v1094_v0 }
 0x1a1   :  { %v1088_v43 = vsel %vm1079_vm1, %v1086_v24, %v1087_v36  ;;  %v1091_v44 = vsel %vm1079_vm1, %v1087_v36, %v1084_v27  ;;  %v1110_v45 = vadd.f32 %v1106_v37, %v1096_v9  ;;  %v1113_v46 = vmul.f32 %v1111_v59, %v1068_v28 }
 0x1a2   :  { %v1119_v47 = vadd.f32 %v1115_v38, %v1101_v10  ;;  %v1141_v48 = vmul.f32 %v1489_v60, %v1088_v43  ;;  %v1142_v49 = vmul.f32 %v1489_v60, %v1091_v44  ;;  %v1150_v50 = vmul.f32 %v1491_v61, %v1088_v43 }
 0x1a3   :  { %v1128_v51 = vadd.f32 %v1124_v18, %v1110_v45  ;;  %v1151_v52 = vmul.f32 %v1491_v61, %v1091_v44  ;;  %v1117_v53 = vadd.f32 %v1113_v46, %v1099_v1  ;;  %v1126_v54 = vadd.f32 %v1122_v22, %v1108_v42 }
 0x1a4   :  { %v1137_v55 = vadd.f32 %v1133_v19, %v1119_v47  ;;  %v1145_v56 = vadd.f32 %v1141_v48, %v1127_v34  ;;  %v1154_v57 = vadd.f32 %v1150_v50, %v1136_v35  ;;  %v1139_v41 = vmul.f32 %v1489_v60, %v1090_v40 }
 0x1a5   :  { %v1146_v58 = vadd.f32 %v1142_v49, %v1128_v51  ;;  %v1135_v0 = vadd.f32 %v1131_v23, %v1117_v53  ;;  %v1140_v59 = vmul.f32 %v1489_v60, %v1089_v39  ;;  %v1148_v2 = vmul.f32 %v1491_v61, %v1090_v40 }
 0x1a6   :  { %v1155_v3 = vadd.f32 %v1151_v52, %v1137_v55  ;;  %v1162_v4 = vadd.f32 %v1145_v56, %v1493_v62  ;;  %v1175_v5 = vadd.f32 %v1154_v57, %v1495_v63  ;;  %v1143_v6 = vadd.f32 %v1139_v41, %v1125_v29 }
 0x1a7   :  { %v1163_v1 = vadd.f32 %v1146_v58, %v1493_v62  ;;  %v1144_v7 = vadd.f32 %v1140_v59, %v1126_v54  ;;  %v1149_v8 = vmul.f32 %v1491_v61, %v1089_v39  ;;  %v1152_v9 = vadd.f32 %v1148_v2, %v1134_v30 }
 0x1a8   :  { %1166 = vst [vmem:[#allocation7 + $0x20] sm:$0xff] %v1162_v4  ;;  %v1176_v10 = vadd.f32 %v1155_v3, %v1495_v63  ;;  %1179 = vst [vmem:[#allocation7 + $0x30] sm:$0xff] %v1175_v5  ;;  %v1160_v60 = vadd.f32 %v1143_v6, %v1493_v62 }
 0x1a9   :  { %1167 = vst [vmem:[#allocation7 + $0x28] sm:$0xff] %v1163_v1  ;;  %v1153_v11 = vadd.f32 %v1149_v8, %v1135_v0  ;;  %v1161_v12 = vadd.f32 %v1144_v7, %v1493_v62  ;;  %v1173_v13 = vadd.f32 %v1152_v9, %v1495_v63 }
 0x1aa   :  { %1180 = vst [vmem:[#allocation7 + $0x38] sm:$0xff] %v1176_v10  ;;  %1164 = vst [vmem:[#allocation7] sm:$0xff] %v1160_v60 }
 0x1ab   :  { %1165 = vst [vmem:[#allocation7 + $0x8] sm:$0xff] %v1161_v12  ;;  %v1174_v61 = vadd.f32 %v1153_v11, %v1495_v63  ;;  %1177 = vst [vmem:[#allocation7 + $0x10] sm:$0xff] %v1173_v13 }
 0x1ad   :  { %1178 = vst [vmem:[#allocation7 + $0x18] sm:$0xff] %v1174_v61 }
 0x1ae   :  { %1364 = shalt.err (!%p1361_p0)
}
 0x1af   :  { %s1365_s23 = scalar_lea.hbm %s1537_s4, 1024 }
 0x1b0   :  { %p1366_p1 = scmp.ne.s32.totalorder %s1537_s4, %s1365_s23  ;;  %p1369_p2 = scmp.lt.u32.totalorder %s1365_s23, %s1537_s4 }
 0x1b2   :  { %p1371_p3 = pnand %p1369_p2, %p1366_p1 }
 0x1b4   :  { %1374 = shalt.err (!%p1371_p3)
}
 0x1b5   :  { %s1385_s26 = smov 128   ;;  %s1386_s27 = smov 8  }
 0x1b6   :  { %1192 = dma.vmem_to_hbm [thread:$0]  %s1187_s19, 1024, %s1537_s4, [#allocation3], %s1385_s26, %s1385_s26, %s1386_s27  }
 0x1b7   :  { %1379 = dma.done.wait [#allocation3], 1024  }
 0x1b8   :  { %1380 = vsyncadd [#allocation3], 4294966272 }
 0x1b9   :  { %1196 = vsyncpa [#allocation3], 1 }
 0x1ba   :  { %1197 = vsyncpa [#allocation4], 1 }
 0x1bb   :  { %1198 = vsyncpa [#allocation6], 1 }

</bundles_post_ra>
